<compile_context>
chip_gen: v7x
topology: tpu7x:2x2x1
jax: 0.10.0
libtpu: 0.0.40
codegen_flags: <defaults>
</compile_context>

<pallas_src>
import functools

import jax
import jax.numpy as jnp
from jax.experimental import pallas as pl
from jax.experimental.pallas import tpu as pltpu

_LANE = 128      # pad feature dims to the vreg lane width
# TODO(synk): on v6e/v7x, use 256-wide N/K tiles once feature dims are large;
# dims here are tiny (16/32/8) so 128 padding is the right choice.
_SUBLANE = 8     # f32 sublane width: batch rounded up to this


def _round_up(n, m):
    return ((n + m - 1) // m) * m


def _mlp_kernel(*refs, num_layers, in_f, pad_input):
    """Fused (Linear -> ReLU)*(L-1) -> Linear; all operands VMEM-resident.

    refs = (x, w0, b0, ..., w_{L-1}, b_{L-1}, out[, xpad_scratch])
    Weights are pre-transposed to (in_pad, out_pad) bf16; biases (1, out_pad) f32.
    Zero padding is exact: padded lanes stay 0 through bias+ReLU and hit
    zero-weight rows of the next layer.
    """
    x_ref = refs[0]
    wb = refs[1:1 + 2 * num_layers]
    o_ref = refs[1 + 2 * num_layers]

    if pad_input:
        xpad_ref = refs[2 + 2 * num_layers]
        # Zero every step (tiny tile, robust under megacore grid sharding),
        # then write the real columns: padded lanes are exactly zero.
        xpad_ref[...] = jnp.zeros_like(xpad_ref)
        xpad_ref[:, :in_f] = x_ref[...]
        h = xpad_ref[...]                              # (tile_b, in_pad) f32
    else:
        h = x_ref[...]

    # Statically unrolled: fine at 3 layers x 128-wide tiles.
    # TODO(synk): for deeper/wider MLPs, stack weights into (L, in_pad, out_pad)
    # and use lax.fori_loop to bound vreg live ranges.
    for i in range(num_layers):
        w = wb[2 * i][...]                             # (in_pad, out_pad) bf16
        b = wb[2 * i + 1][...]                         # (1, out_pad) f32
        h = jnp.dot(h.astype(w.dtype), w,
                    preferred_element_type=jnp.float32) + b
        if i < num_layers - 1:
            h = jnp.maximum(h, 0.0)                    # ReLU, f32 epilogue
    o_ref[...] = h.astype(o_ref.dtype)


def init_mlp_params(key, in_channels, hidden_layers, out_channels):
    """Mirrors nn.Linear default init: U[-1/sqrt(fan_in), 1/sqrt(fan_in)]."""
    sizes = [in_channels] + list(hidden_layers) + [out_channels]
    params = []
    for i in range(len(sizes) - 1):
        fan_in, fan_out = sizes[i], sizes[i + 1]
        key, kw, kb = jax.random.split(key, 3)
        bound = float(fan_in) ** -0.5
        w = jax.random.uniform(kw, (fan_out, fan_in), jnp.float32, -bound, bound)
        b = jax.random.uniform(kb, (fan_out,), jnp.float32, -bound, bound)
        params.append((w, b))
    return params


def prepare_params(params, in_channels):
    """One-time: transpose weights to (in, out), cast to bf16, zero-pad
    feature dims to 128 lanes. Biases stay f32 (epilogue precision)."""
    dims = [in_channels] + [w.shape[0] for w, _ in params]
    dims_pad = tuple(_round_up(d, _LANE) for d in dims)
    packed = []
    for i, (w, b) in enumerate(params):
        out_f, in_f = w.shape
        wt = jnp.zeros((dims_pad[i], dims_pad[i + 1]), jnp.bfloat16)
        wt = wt.at[:in_f, :out_f].set(w.T.astype(jnp.bfloat16))
        bp = jnp.zeros((1, dims_pad[i + 1]), jnp.float32)
        bp = bp.at[0, :out_f].set(b)
        packed.extend([wt, bp])
    return tuple(packed), dims_pad


@functools.partial(jax.jit, static_argnames=("dims_pad",))
def mlp_forward(x, packed, *, dims_pad):
    """Single fused pallas_call for the whole MLP.

    Returns the lane-dense padded output (B_pad, out_pad); consumers take it
    directly or fuse the [:B, :out_channels] slice into the next op.
    """
    B, in_f = x.shape
    num_layers = len(packed) // 2
    in_pad, out_pad = dims_pad[0], dims_pad[-1]

    B_pad = _round_up(B, _SUBLANE)
    if B_pad != B:
        x = jnp.pad(x, ((0, B_pad - B), (0, 0)))

    # Batch tile: weights stay VMEM-resident across steps; a "parallel" batch
    # axis lets v7x shard grid steps across its two TensorCores at real B.
    tile_b = B_pad if B_pad <= 256 else 256
    while B_pad % tile_b:
        tile_b //= 2
    grid = (B_pad // tile_b,)

    pad_input = in_f < in_pad

    in_specs = [pl.BlockSpec((tile_b, in_f), lambda i: (i, 0))]
    for li in range(num_layers):
        in_specs.append(pl.BlockSpec((dims_pad[li], dims_pad[li + 1]),
                                     lambda i: (0, 0)))      # resident weight
        in_specs.append(pl.BlockSpec((1, dims_pad[li + 1]),
                                     lambda i: (0, 0)))      # resident bias
    out_specs = pl.BlockSpec((tile_b, out_pad), lambda i: (i, 0))

    scratch_shapes = []
    if pad_input:
        scratch_shapes.append(pltpu.VMEM((tile_b, in_pad), jnp.float32))

    # Explicit VMEM budget (v5e scoped default 16 MiB; v7x physical 64 MiB).
    w_bytes = sum(dims_pad[i] * dims_pad[i + 1] * 2 + dims_pad[i + 1] * 4
                  for i in range(num_layers))
    io_bytes = tile_b * (in_f + out_pad) * 4
    scr_bytes = tile_b * in_pad * 4 if pad_input else 0
    est = 2 * (w_bytes + io_bytes) + scr_bytes            # x2 double buffering
    vmem_limit = int(min(64 * 2**20, max(16 * 2**20, 2 * est)))

    cost = pl.CostEstimate(
        flops=2 * B_pad * sum(dims_pad[i] * dims_pad[i + 1]
                              for i in range(num_layers)),
        transcendentals=0,
        bytes_accessed=B_pad * in_f * 4 + B_pad * out_pad * 4 + w_bytes,
    )

    y_pad = pl.pallas_call(
        functools.partial(_mlp_kernel, num_layers=num_layers,
                          in_f=in_f, pad_input=pad_input),
        grid=grid,
        out_shape=jax.ShapeDtypeStruct((B_pad, out_pad), jnp.float32),
        in_specs=in_specs,
        out_specs=out_specs,
        scratch_shapes=scratch_shapes,
        compiler_params=pltpu.CompilerParams(
            dimension_semantics=("parallel",),
            vmem_limit_bytes=vmem_limit),
        cost_estimate=cost,
    )(x, *packed)
    return y_pad


if __name__ == "__main__":
    in_channels = 16
    hidden_layers = [32, 32]
    out_channels = 8
    batch = 64          # more rows per call amortize dispatch / MXU fill

    key = jax.random.PRNGKey(0)
    key, kx = jax.random.split(key)
    x = jax.random.normal(kx, (batch, in_channels), jnp.float32)

    params = init_mlp_params(key, in_channels, hidden_layers, out_channels)
    packed, dims_pad = prepare_params(params, in_channels)

    y_pad = mlp_forward(x, packed, dims_pad=dims_pad)
    jax.block_until_ready(y_pad)
    y = y_pad[:batch, :out_channels]     # consumer-side slice of padded output

    # Pure-JAX reference with matched bf16 matmul operands / f32 accumulation.
    ref = x
    for i, (w, b) in enumerate(params):
        ref = jnp.dot(ref.astype(jnp.bfloat16), w.T.astype(jnp.bfloat16),
                      preferred_element_type=jnp.float32) + b
        if i < len(params) - 1:
            ref = jnp.maximum(ref, 0.0)

    assert y.shape == (batch, out_channels)
    assert jnp.allclose(y, ref, atol=2e-3, rtol=2e-3), \
        float(jnp.max(jnp.abs(y - ref)))

    print("KERNEL_OK")
</pallas_src>

<mosaic_0001>
module attributes {stable_mosaic.version = 11 : i64} {
  func.func @_mlp_kernel(%arg0: i32, %arg1: memref<64x16xf32, #tpu.memory_space<vmem>>, %arg2: memref<128x128xbf16, #tpu.memory_space<vmem>>, %arg3: memref<1x128xf32, #tpu.memory_space<vmem>>, %arg4: memref<128x128xbf16, #tpu.memory_space<vmem>>, %arg5: memref<1x128xf32, #tpu.memory_space<vmem>>, %arg6: memref<128x128xbf16, #tpu.memory_space<vmem>>, %arg7: memref<1x128xf32, #tpu.memory_space<vmem>>, %arg8: memref<64x128xf32, #tpu.memory_space<vmem>>, %arg9: memref<64x128xf32, #tpu.memory_space<vmem>>) attributes {dimension_semantics = [#tpu.dimension_semantics<parallel>], iteration_bounds = array<i64: 1>, scalar_prefetch = 0 : i64, scratch_operands = 1 : i64, tpu.core_type = #tpu.core_type<tc>, window_params = [{transform_indices = @transform_0, window_bounds = array<i64: 64, 16>}, {pipeline_mode = #tpu.pipeline_mode<synchronous>, transform_indices = @transform_1, window_bounds = array<i64: 128, 128>}, {pipeline_mode = #tpu.pipeline_mode<synchronous>, transform_indices = @transform_2, window_bounds = array<i64: 1, 128>}, {pipeline_mode = #tpu.pipeline_mode<synchronous>, transform_indices = @transform_3, window_bounds = array<i64: 128, 128>}, {pipeline_mode = #tpu.pipeline_mode<synchronous>, transform_indices = @transform_4, window_bounds = array<i64: 1, 128>}, {pipeline_mode = #tpu.pipeline_mode<synchronous>, transform_indices = @transform_5, window_bounds = array<i64: 128, 128>}, {pipeline_mode = #tpu.pipeline_mode<synchronous>, transform_indices = @transform_6, window_bounds = array<i64: 1, 128>}, {transform_indices = @transform_7, window_bounds = array<i64: 64, 128>}]} {
    %cst = arith.constant 0.000000e+00 : f32
    %0 = vector.broadcast %cst : f32 to vector<64x128xf32>
    %c0 = arith.constant 0 : index
    %c0_0 = arith.constant 0 : index
    %1 = vector.load %arg9[%c0, %c0_0] : memref<64x128xf32, #tpu.memory_space<vmem>>, vector<64x128xf32>
    tpu.vector_store %arg9[%c0, %c0_0], %0 {strides = array<i32>} : memref<64x128xf32, #tpu.memory_space<vmem>>, vector<64x128xf32>,
    %c0_1 = arith.constant 0 : index
    %c0_2 = arith.constant 0 : index
    %2 = vector.load %arg1[%c0_1, %c0_2] : memref<64x16xf32, #tpu.memory_space<vmem>>, vector<64x16xf32>
    %c0_3 = arith.constant 0 : index
    %c0_4 = arith.constant 0 : index
    %3 = vector.load %arg9[%c0_3, %c0_4] : memref<64x128xf32, #tpu.memory_space<vmem>>, vector<64x16xf32>
    tpu.vector_store %arg9[%c0_3, %c0_4], %2 {strides = array<i32>} : memref<64x128xf32, #tpu.memory_space<vmem>>, vector<64x16xf32>,
    %c0_5 = arith.constant 0 : index
    %c0_6 = arith.constant 0 : index
    %4 = vector.load %arg9[%c0_5, %c0_6] : memref<64x128xf32, #tpu.memory_space<vmem>>, vector<64x128xf32>
    %c0_7 = arith.constant 0 : index
    %c0_8 = arith.constant 0 : index
    %5 = vector.load %arg2[%c0_7, %c0_8] : memref<128x128xbf16, #tpu.memory_space<vmem>>, vector<128x128xbf16>
    %c0_9 = arith.constant 0 : index
    %c0_10 = arith.constant 0 : index
    %6 = vector.load %arg3[%c0_9, %c0_10] : memref<1x128xf32, #tpu.memory_space<vmem>>, vector<1x128xf32>
    %7 = arith.truncf %4 : vector<64x128xf32> to vector<64x128xbf16>
    %cst_11 = arith.constant dense<0.000000e+00> : vector<64x128xf32>
    %8 = tpu.matmul %7, %5, %cst_11 {dimension_numbers = #tpu.dot_dimension_numbers<[1], [0], [0], [1], [0, 0, 1, 1], [], []>} : vector<64x128xbf16>, vector<128x128xbf16>, vector<64x128xf32> -> vector<64x128xf32>
    %9 = vector.broadcast %6 : vector<1x128xf32> to vector<64x128xf32>
    %10 = arith.addf %8, %9 : vector<64x128xf32>
    %cst_12 = arith.constant 0.000000e+00 : f32
    %11 = vector.broadcast %cst_12 : f32 to vector<64x128xf32>
    %12 = arith.maximumf %10, %11 : vector<64x128xf32>
    %c0_13 = arith.constant 0 : index
    %c0_14 = arith.constant 0 : index
    %13 = vector.load %arg4[%c0_13, %c0_14] : memref<128x128xbf16, #tpu.memory_space<vmem>>, vector<128x128xbf16>
    %c0_15 = arith.constant 0 : index
    %c0_16 = arith.constant 0 : index
    %14 = vector.load %arg5[%c0_15, %c0_16] : memref<1x128xf32, #tpu.memory_space<vmem>>, vector<1x128xf32>
    %15 = arith.truncf %12 : vector<64x128xf32> to vector<64x128xbf16>
    %cst_17 = arith.constant dense<0.000000e+00> : vector<64x128xf32>
    %16 = tpu.matmul %15, %13, %cst_17 {dimension_numbers = #tpu.dot_dimension_numbers<[1], [0], [0], [1], [0, 0, 1, 1], [], []>} : vector<64x128xbf16>, vector<128x128xbf16>, vector<64x128xf32> -> vector<64x128xf32>
    %17 = vector.broadcast %14 : vector<1x128xf32> to vector<64x128xf32>
    %18 = arith.addf %16, %17 : vector<64x128xf32>
    %cst_18 = arith.constant 0.000000e+00 : f32
    %19 = vector.broadcast %cst_18 : f32 to vector<64x128xf32>
    %20 = arith.maximumf %18, %19 : vector<64x128xf32>
    %c0_19 = arith.constant 0 : index
    %c0_20 = arith.constant 0 : index
    %21 = vector.load %arg6[%c0_19, %c0_20] : memref<128x128xbf16, #tpu.memory_space<vmem>>, vector<128x128xbf16>
    %c0_21 = arith.constant 0 : index
    %c0_22 = arith.constant 0 : index
    %22 = vector.load %arg7[%c0_21, %c0_22] : memref<1x128xf32, #tpu.memory_space<vmem>>, vector<1x128xf32>
    %23 = arith.truncf %20 : vector<64x128xf32> to vector<64x128xbf16>
    %cst_23 = arith.constant dense<0.000000e+00> : vector<64x128xf32>
    %24 = tpu.matmul %23, %21, %cst_23 {dimension_numbers = #tpu.dot_dimension_numbers<[1], [0], [0], [1], [0, 0, 1, 1], [], []>} : vector<64x128xbf16>, vector<128x128xbf16>, vector<64x128xf32> -> vector<64x128xf32>
    %25 = vector.broadcast %22 : vector<1x128xf32> to vector<64x128xf32>
    %26 = arith.addf %24, %25 : vector<64x128xf32>
    %c0_24 = arith.constant 0 : index
    %c0_25 = arith.constant 0 : index
    %27 = vector.load %arg8[%c0_24, %c0_25] : memref<64x128xf32, #tpu.memory_space<vmem>>, vector<64x128xf32>
    tpu.vector_store %arg8[%c0_24, %c0_25], %26 {strides = array<i32>} : memref<64x128xf32, #tpu.memory_space<vmem>>, vector<64x128xf32>,
    return
  }
  func.func @transform_0(%arg0: i32) -> (i32, i32) {
    %c0_i32 = arith.constant 0 : i32
    %c0_i32_0 = arith.constant 0 : i32
    return %arg0, %c0_i32 : i32, i32
  }
  func.func @transform_1(%arg0: i32) -> (i32, i32) {
    %c0_i32 = arith.constant 0 : i32
    %c0_i32_0 = arith.constant 0 : i32
    %c0_i32_1 = arith.constant 0 : i32
    return %c0_i32, %c0_i32_0 : i32, i32
  }
  func.func @transform_2(%arg0: i32) -> (i32, i32) {
    %c0_i32 = arith.constant 0 : i32
    %c0_i32_0 = arith.constant 0 : i32
    %c0_i32_1 = arith.constant 0 : i32
    return %c0_i32, %c0_i32_0 : i32, i32
  }
  func.func @transform_3(%arg0: i32) -> (i32, i32) {
    %c0_i32 = arith.constant 0 : i32
    %c0_i32_0 = arith.constant 0 : i32
    %c0_i32_1 = arith.constant 0 : i32
    return %c0_i32, %c0_i32_0 : i32, i32
  }
  func.func @transform_4(%arg0: i32) -> (i32, i32) {
    %c0_i32 = arith.constant 0 : i32
    %c0_i32_0 = arith.constant 0 : i32
    %c0_i32_1 = arith.constant 0 : i32
    return %c0_i32, %c0_i32_0 : i32, i32
  }
  func.func @transform_5(%arg0: i32) -> (i32, i32) {
    %c0_i32 = arith.constant 0 : i32
    %c0_i32_0 = arith.constant 0 : i32
    %c0_i32_1 = arith.constant 0 : i32
    return %c0_i32, %c0_i32_0 : i32, i32
  }
  func.func @transform_6(%arg0: i32) -> (i32, i32) {
    %c0_i32 = arith.constant 0 : i32
    %c0_i32_0 = arith.constant 0 : i32
    %c0_i32_1 = arith.constant 0 : i32
    return %c0_i32, %c0_i32_0 : i32, i32
  }
  func.func @transform_7(%arg0: i32) -> (i32, i32) {
    %c0_i32 = arith.constant 0 : i32
    %c0_i32_0 = arith.constant 0 : i32
    return %arg0, %c0_i32 : i32, i32
  }
}

</mosaic_0001>

<bundles_post_ra>
// kernel: mlp_forward.1
= control target key start
LH: loop header
LB: loop body
LE: loop exit
PB: predicated region body
PF: predicated region fallthrough
CT: control target
= control target key end

     0   :  { %12 = vsyncpa [#allocation4], 0  ;;  %s955_s0 = inlined_call_operand.vmem [shape: f32[64,16], index: 0, kind: input, shape index: {}]   ;;  %s956_s1 = inlined_call_operand.vmem [shape: bf16[128,128], index: 1, kind: input, shape index: {}]   ;;  %s957_s2 = inlined_call_operand.vmem [shape: f32[1,128], index: 2, kind: input, shape index: {}]   ;;  %s958_s3 = inlined_call_operand.hbm [shape: bf16[128,128], index: 3, kind: input, shape index: {}]   ;;  %s959_s4 = inlined_call_operand.vmem [shape: f32[1,128], index: 4, kind: input, shape index: {}]   ;;  %s960_s5 = inlined_call_operand.hbm [shape: bf16[128,128], index: 5, kind: input, shape index: {}]   ;;  %s961_s6 = inlined_call_operand.vmem [shape: f32[1,128], index: 6, kind: input, shape index: {}]   ;;  %s962_s7 = inlined_call_operand.hbm [shape: f32[64,128], index: 7, kind: output, shape index: {}]  }
   0x1   :  { %13 = vsyncpa [#allocation7], 0 }
   0x2   :  { %14 = vsyncpa [#allocation5], 0  ;;  %s806_s24 = smov [#allocation3]   ;;  %s734_s28 = scalar_lea.hbm %s958_s3, 1024 }
   0x3   :  { %s26_s25 = sshll.u32 %s806_s24, 4  ;;  %p735_p0 = scmp.ne.s32.totalorder %s958_s3, %s734_s28  ;;  %s27_s25 = int_to_ptr.vmem [resolvable:$true] %s26_s25 }
   0x4   :  { %p738_p1 = scmp.lt.u32.totalorder %s734_s28, %s958_s3 }
   0x6   :  { %p740_p2 = pnand %p738_p1, %p735_p0 }
   0x8   :  { %743 = shalt.err (!%p740_p2)
}
   0x9   :  { %s744_s10 = scalar_lea.vmem %s27_s25, 1024  ;;  %p749_p4 = scmp.lt.s32.totalorder %s27_s25, %s27_s25 }
   0xa   :  { %p745_p3 = scmp.ne.s32.totalorder %s27_s25, %s744_s10  ;;  %p750_p5 = scmp.lt.s32.totalorder %s744_s10, %s744_s10 }
   0xc   :  { %p751_p6 = por %p750_p5, %p749_p4 }
   0xe   :  { %p752_p7 = pnand %p751_p6, %p745_p3 }
  0x10   :  { %755 = shalt.err (!%p752_p7)
}
  0x11   :  { %s807_s11 = smov 64   ;;  %s808_s12 = smov 4  }
  0x12   :  { %32 = dma.hbm_to_vmem [thread:$0]  %s958_s3, 1024, %s27_s25, [#allocation4], %s807_s11, %s807_s11, %s808_s12  }
  0x13   :  { %s809_s15 = smov [#allocation6]   ;;  %s756_s19 = scalar_lea.hbm %s960_s5, 1024 }
  0x14   :  { %s40_s16 = sshll.u32 %s809_s15, 4  ;;  %p757_p8 = scmp.ne.s32.totalorder %s960_s5, %s756_s19  ;;  %s41_s16 = int_to_ptr.vmem [resolvable:$true] %s40_s16 }
  0x15   :  { %p760_p9 = scmp.lt.u32.totalorder %s756_s19, %s960_s5 }
  0x17   :  { %p762_p10 = pnand %p760_p9, %p757_p8 }
  0x19   :  { %765 = shalt.err (!%p762_p10)
}
  0x1a   :  { %s766_s24 = scalar_lea.vmem %s41_s16, 1024  ;;  %p771_p12 = scmp.lt.s32.totalorder %s41_s16, %s41_s16 }
  0x1b   :  { %p767_p11 = scmp.ne.s32.totalorder %s41_s16, %s766_s24  ;;  %p772_p13 = scmp.lt.s32.totalorder %s766_s24, %s766_s24 }
  0x1d   :  { %p773_p0 = por %p772_p13, %p771_p12 }
  0x1f   :  { %p774_p1 = pnand %p773_p0, %p767_p11 }
  0x21   :  { %777 = shalt.err (!%p774_p1)
}
  0x22   :  { %46 = dma.hbm_to_vmem [thread:$0]  %s960_s5, 1024, %s41_s16, [#allocation7], %s807_s11, %s807_s11, %s808_s12  }
  0x23   :  { %800 = dma.done.wait [#allocation4], 1024  }
  0x24   :  { %801 = vsyncadd [#allocation4], 4294966272 }
  0x25   :  { %802 = dma.done.wait [#allocation7], 1024  }
  0x26   :  { %803 = vsyncadd [#allocation7], 4294966272  ;;  %v810_v0 = vmov 0.0   ;;  %v710_v1 = vld [vmem:[%s956_s1] sm:$0xff]   ;;  %v711_v2 = vld [vmem:[%s956_s1 + $0x8] sm:$0xff]   ;;  %vm72_vm0 = vcmask 130048  }
  0x27   :  { %56 = vst [vmem:[#allocation2] sm:$0xff] %v810_v0  ;;  %57 = vst [vmem:[#allocation2 + $0x8] sm:$0xff] %v810_v0  ;;  %614 = vmatprep.subr.bf16.mxu0 %v710_v1  ;;  %v712_v3 = vld [vmem:[%s956_s1 + $0x10] sm:$0xff]   ;;  %v713_v4 = vld [vmem:[%s956_s1 + $0x18] sm:$0xff]   ;;  %s811_s11 = smov [#allocation8]  }
  0x28   :  { %58 = vst [vmem:[#allocation2 + $0x10] sm:$0xff] %v810_v0  ;;  %59 = vst [vmem:[#allocation2 + $0x18] sm:$0xff] %v810_v0  ;;  %615 = vmatpush3.bf16.msra.mxu0 %v710_v1  ;;  %v64_v5 = vld [vmem:[%s955_s0] sm:$0xff]  ;;  %v65_v6 = vld [vmem:[%s955_s0 + $0x8] sm:$0xff]  ;;  %s538_s12 = sshll.u32 %s811_s11, 4  ;;  %s539_s12 = int_to_ptr.vmem [resolvable:$true] %s538_s12 }
  0x29   :  { %60 = vst [vmem:[#allocation2 + $0x20] sm:$0xff] %v810_v0  ;;  %61 = vst [vmem:[#allocation2 + $0x28] sm:$0xff] %v810_v0  ;;  %616 = vmatprep.subr.bf16.mxu0 %v711_v2  ;;  %v66_v7 = vld [vmem:[%s955_s0 + $0x10] sm:$0xff]  ;;  %v67_v8 = vld [vmem:[%s955_s0 + $0x18] sm:$0xff]  ;;  %p783_p3 = scmp.lt.s32.totalorder %s539_s12, %s539_s12 }
  0x2a   :  { %62 = vst [vmem:[#allocation2 + $0x30] sm:$0xff] %v810_v0  ;;  %63 = vst [vmem:[#allocation2 + $0x38] sm:$0xff] %v810_v0  ;;  %v68_v9 = vld [vmem:[%s955_s0 + $0x20] sm:$0xff]  ;;  %v69_v10 = vld [vmem:[%s955_s0 + $0x28] sm:$0xff] }
  0x2b   :  { %73 = vst.msk [vmem:[#allocation2] sm:$0xff] %vm72_vm0, %v64_v5  ;;  %74 = vst.msk [vmem:[#allocation2 + $0x8] sm:$0xff] %vm72_vm0, %v65_v6  ;;  %v714_v11 = vld [vmem:[%s956_s1 + $0x20] sm:$0xff]   ;;  %v70_v12 = vld [vmem:[%s955_s0 + $0x30] sm:$0xff] }
  0x2c   :  { %617 = vmatpush3.bf16.msra.mxu0 %v711_v2  ;;  %75 = vst.msk [vmem:[#allocation2 + $0x10] sm:$0xff] %vm72_vm0, %v66_v7  ;;  %76 = vst.msk [vmem:[#allocation2 + $0x18] sm:$0xff] %vm72_vm0, %v67_v8  ;;  %v71_v13 = vld [vmem:[%s955_s0 + $0x38] sm:$0xff]  ;;  %v718_v14 = vld [vmem:[#allocation3] sm:$0xff]  }
  0x2d   :  { %618 = vmatprep.subr.bf16.mxu0 %v712_v3  ;;  %77 = vst.msk [vmem:[#allocation2 + $0x20] sm:$0xff] %vm72_vm0, %v68_v9  ;;  %78 = vst.msk [vmem:[#allocation2 + $0x28] sm:$0xff] %vm72_vm0, %v69_v10  ;;  %v719_v15 = vld [vmem:[#allocation3 + $0x8] sm:$0xff]   ;;  %638 = vmatprep.subr.bf16.mxu1 %v718_v14  ;;  %v720_v19 = vld [vmem:[#allocation3 + $0x10] sm:$0xff]  }
  0x2e   :  { %79 = vst.msk [vmem:[#allocation2 + $0x30] sm:$0xff] %vm72_vm0, %v70_v12  ;;  %80 = vst.msk [vmem:[#allocation2 + $0x38] sm:$0xff] %vm72_vm0, %v71_v13  ;;  %639 = vmatpush3.bf16.msra.mxu1 %v718_v14  ;;  %v715_v16 = vld [vmem:[%s956_s1 + $0x28] sm:$0xff]   ;;  %v716_v21 = vld [vmem:[%s956_s1 + $0x30] sm:$0xff]  }
  0x2f   :  { %640 = vmatprep.subr.bf16.mxu1 %v719_v15  ;;  %v721_v22 = vld [vmem:[#allocation3 + $0x18] sm:$0xff]   ;;  %v722_v23 = vld [vmem:[#allocation3 + $0x20] sm:$0xff]   ;;  %v723_v27 = vld [vmem:[#allocation3 + $0x28] sm:$0xff]  }
  0x30   :  { %619 = vmatpush3.bf16.msra.mxu0 %v712_v3  ;;  %v717_v24 = vld [vmem:[%s956_s1 + $0x38] sm:$0xff]   ;;  %v724_v35 = vld [vmem:[#allocation3 + $0x30] sm:$0xff]   ;;  %v726_v37 = vld [vmem:[#allocation6] sm:$0xff]  }
  0x31   :  { %620 = vmatprep.subr.bf16.mxu0 %v713_v4  ;;  %v725_v36 = vld [vmem:[#allocation3 + $0x38] sm:$0xff]   ;;  %v727_v38 = vld [vmem:[#allocation6 + $0x8] sm:$0xff]   ;;  %v728_v39 = vld [vmem:[#allocation6 + $0x10] sm:$0xff]  }
  0x32   :  { %v81_v17 = vld [vmem:[#allocation2] sm:$0xff]  ;;  %v82_v18 = vld [vmem:[#allocation2 + $0x8] sm:$0xff]  ;;  %641 = vmatpush3.bf16.msra.mxu1 %v719_v15  ;;  %v729_v40 = vld [vmem:[#allocation6 + $0x18] sm:$0xff]  }
  0x33   :  { %v106_v20 = vpack.c.bf16 %v82_v18, %v81_v17  ;;  %642 = vmatprep.subr.bf16.mxu1 %v720_v19  ;;  %v83_v25 = vld [vmem:[#allocation2 + $0x10] sm:$0xff]  ;;  %v84_v26 = vld [vmem:[#allocation2 + $0x18] sm:$0xff]  ;;  %v730_v41 = vld [vmem:[#allocation6 + $0x20] sm:$0xff]  }
  0x34   :  { %621 = vmatpush3.bf16.msra.mxu0 %v713_v4  ;;  %v85_v28 = vld [vmem:[#allocation2 + $0x20] sm:$0xff]  ;;  %v86_v29 = vld [vmem:[#allocation2 + $0x28] sm:$0xff]  ;;  %v107_v30 = vpack.c.bf16 %v84_v26, %v83_v25  ;;  %v732_v8 = vld [vmem:[#allocation6 + $0x30] sm:$0xff]  }
  0x35   :  { %622 = vmatprep.subr.bf16.mxu0 %v714_v11  ;;  %630 = vmatprep.mubr.bf16.mxu0 %v106_v20  ;;  %v108_v31 = vpack.c.bf16 %v86_v29, %v85_v28  ;;  %v87_v32 = vld [vmem:[#allocation2 + $0x30] sm:$0xff]  ;;  %v88_v33 = vld [vmem:[#allocation2 + $0x38] sm:$0xff]  ;;  %v731_v42 = vld [vmem:[#allocation6 + $0x28] sm:$0xff]  }
  0x36   :  { %643 = vmatpush3.bf16.msra.mxu1 %v720_v19  ;;  %v109_v34 = vpack.c.bf16 %v88_v33, %v87_v32  ;;  %v551_v43 = vld [vmem:[%s957_s2] ss:$0 sm:$0xff]  ;;  %v733_v9 = vld [vmem:[#allocation6 + $0x38] sm:$0xff]  }
  0x37   :  { %644 = vmatprep.subr.bf16.mxu1 %v721_v22  ;;  %v560_v10 = vld [vmem:[%s959_s4] ss:$0 sm:$0xff] }
  0x38   :  { %623 = vmatpush3.bf16.msra.mxu0 %v714_v11 }
  0x39   :  { %624 = vmatprep.subr.bf16.mxu0 %v715_v16 }
  0x3a   :  { %645 = vmatpush3.bf16.msra.mxu1 %v721_v22 }
  0x3b   :  { %646 = vmatprep.subr.bf16.mxu1 %v722_v23 }
  0x3c   :  { %625 = vmatpush3.bf16.msra.mxu0 %v715_v16 }
  0x3d   :  { %626 = vmatprep.subr.bf16.mxu0 %v716_v21 }
  0x3e   :  { %647 = vmatpush3.bf16.msra.mxu1 %v722_v23 }
  0x3f   :  { %648 = vmatprep.subr.bf16.mxu1 %v723_v27 }
  0x40   :  { %627 = vmatpush3.bf16.msra.mxu0 %v716_v21 }
  0x41   :  { %628 = vmatprep.subr.bf16.mxu0 %v717_v24 }
  0x42   :  { %649 = vmatpush3.bf16.msra.mxu1 %v723_v27 }
  0x43   :  { %650 = vmatprep.subr.bf16.mxu1 %v724_v35 }
  0x44   :  { %629 = vmatpush3.bf16.msra.mxu0 %v717_v24 }
  0x45   :  { %662 = vmatprep.subr.bf16.mxu0 %v726_v37 }
  0x46   :  { %651 = vmatpush3.bf16.msra.mxu1 %v724_v35 }
  0x47   :  { %631 = vmatmul.mubr.bf16.vlgmr.msra.gmra.mrb[0].mxu0 %v107_v30  ;;  %652 = vmatprep.subr.bf16.mxu1 %v725_v36 }
  0x48   :  { %634 = vmatprep.mubr.bf16.mxu0 %v108_v31  ;;  %663 = vmatpush3.bf16.msra.mxu0 %v726_v37 }
  0x49   :  { %664 = vmatprep.subr.bf16.mxu0 %v727_v38 }
  0x4a   :  { %653 = vmatpush3.bf16.msra.mxu1 %v725_v36 }
  0x4b   :  { %686 = vmatprep.subr.bf16.mxu1 %v726_v37 }
  0x4c   :  { %665 = vmatpush3.bf16.msra.mxu0 %v727_v38 }
  0x4d   :  { %666 = vmatprep.subr.bf16.mxu0 %v728_v39 }
  0x4f   :  { %635 = vmatmul.mubr.bf16.gmra.mrb[4].mxu0 %v109_v34 }
  0x50   :  { %667 = vmatpush3.bf16.msra.mxu0 %v728_v39 }
  0x51   :  { %668 = vmatprep.subr.bf16.mxu0 %v729_v40 }
  0x54   :  { %669 = vmatpush3.bf16.msra.mxu0 %v729_v40 }
  0x55   :  { %670 = vmatprep.subr.bf16.mxu0 %v730_v41 }
  0x58   :  { %671 = vmatpush3.bf16.msra.mxu0 %v730_v41 }
  0x59   :  { %672 = vmatprep.subr.bf16.mxu0 %v731_v42 }
  0x5c   :  { %673 = vmatpush3.bf16.msra.mxu0 %v731_v42 }
  0x5d   :  { %674 = vmatprep.subr.bf16.mxu0 %v732_v8 }
  0x60   :  { %675 = vmatpush3.bf16.msra.mxu0 %v732_v8 }
  0x61   :  { %676 = vmatprep.subr.bf16.mxu0 %v733_v9 }
  0x64   :  { %677 = vmatpush3.bf16.msra.mxu0 %v733_v9 }
 0x11a   :  { %v632_v44 = vpop.f32.mrb[0].mxu0 }
 0x11b   :  { %v207_v45 = vadd.f32 %v632_v44, %v551_v43  ;;  %v198_v46 = vpop.f32.mrb[1].mxu0 }
 0x11c   :  { %v199_v47 = vadd.f32 %v551_v43, %v198_v46  ;;  %v633_v48 = vpop.f32.mrb[2].mxu0 }
 0x11d   :  { %v210_v49 = vadd.f32 %v633_v48, %v551_v43  ;;  %v201_v50 = vpop.f32.mrb[3].mxu0  ;;  %v231_v52 = vmax.f32 %v207_v45, 0.0 }
 0x11e   :  { %v202_v51 = vadd.f32 %v551_v43, %v201_v50  ;;  %v229_v54 = vmax.f32 %v199_v47, 0.0 }
 0x11f   :  { %v232_v53 = vmax.f32 %v210_v49, 0.0 }
 0x120   :  { %v230_v55 = vmax.f32 %v202_v51, 0.0 }
 0x121   :  { %v255_v56 = vpack.c.bf16 %v232_v53, %v231_v52 }
 0x122   :  { %v636_v57 = vpop.f32.mrb[4].mxu0  ;;  %v254_v58 = vpack.c.bf16 %v230_v55, %v229_v54 }
 0x123   :  { %v223_v59 = vadd.f32 %v636_v57, %v551_v43  ;;  %v214_v60 = vpop.f32.mrb[5].mxu0 }
 0x124   :  { %v215_v61 = vadd.f32 %v551_v43, %v214_v60  ;;  %v637_v62 = vpop.f32.mrb[6].mxu0  ;;  %654 = vmatprep.mubr.bf16.mxu1 %v254_v58 }
 0x125   :  { %v226_v63 = vadd.f32 %v637_v62, %v551_v43  ;;  %v217_v0 = vpop.f32.mrb[7].mxu0  ;;  %655 = vmatmul.mubr.bf16.vlgmr.msra.gmra.mrb[0].mxu1 %v255_v56  ;;  %v235_v2 = vmax.f32 %v223_v59, 0.0 }
 0x126   :  { %v218_v1 = vadd.f32 %v551_v43, %v217_v0  ;;  %694 = vmatpush3.bf16.msra.mxu1 %v726_v37  ;;  %v233_v4 = vmax.f32 %v215_v61, 0.0 }
 0x127   :  { %v236_v3 = vmax.f32 %v226_v63, 0.0  ;;  %687 = vmatprep.subr.bf16.mxu1 %v727_v38 }
 0x128   :  { %v234_v5 = vmax.f32 %v218_v1, 0.0 }
 0x129   :  { %v257_v6 = vpack.c.bf16 %v236_v3, %v235_v2 }
 0x12a   :  { %v256_v7 = vpack.c.bf16 %v234_v5, %v233_v4  ;;  %695 = vmatpush3.bf16.msra.mxu1 %v727_v38 }
 0x12b   :  { %688 = vmatprep.subr.bf16.mxu1 %v728_v39 }
 0x12c   :  { %658 = vmatprep.mubr.bf16.mxu1 %v256_v7 }
 0x12d   :  { %659 = vmatmul.mubr.bf16.gmra.mrb[4].mxu1 %v257_v6 }
 0x12e   :  { %696 = vmatpush3.bf16.msra.mxu1 %v728_v39  ;;  %v569_v39 = vld [vmem:[%s961_s6] ss:$0 sm:$0xff]  ;;  %s778_s6 = scalar_lea.vmem %s539_s12, 1024 }
 0x12f   :  { %689 = vmatprep.subr.bf16.mxu1 %v729_v40  ;;  %p779_p2 = scmp.ne.s32.totalorder %s539_s12, %s778_s6  ;;  %p784_p4 = scmp.lt.s32.totalorder %s778_s6, %s778_s6 }
 0x131   :  { %p785_p5 = por %p784_p4, %p783_p3 }
 0x132   :  { %697 = vmatpush3.bf16.msra.mxu1 %v729_v40 }
 0x133   :  { %690 = vmatprep.subr.bf16.mxu1 %v730_v41  ;;  %p786_p6 = pnand %p785_p5, %p779_p2 }
 0x136   :  { %698 = vmatpush3.bf16.msra.mxu1 %v730_v41 }
 0x137   :  { %691 = vmatprep.subr.bf16.mxu1 %v731_v42 }
 0x13a   :  { %699 = vmatpush3.bf16.msra.mxu1 %v731_v42 }
 0x13b   :  { %692 = vmatprep.subr.bf16.mxu1 %v732_v8 }
 0x13e   :  { %700 = vmatpush3.bf16.msra.mxu1 %v732_v8 }
 0x13f   :  { %693 = vmatprep.subr.bf16.mxu1 %v733_v9 }
 0x142   :  { %701 = vmatpush3.bf16.msra.mxu1 %v733_v9 }
 0x1f8   :  { %v656_v11 = vpop.f32.mrb[0].mxu1 }
 0x1f9   :  { %v355_v12 = vadd.f32 %v656_v11, %v560_v10  ;;  %v346_v13 = vpop.f32.mrb[1].mxu1 }
 0x1fa   :  { %v347_v14 = vadd.f32 %v560_v10, %v346_v13  ;;  %v657_v15 = vpop.f32.mrb[2].mxu1 }
 0x1fb   :  { %v358_v16 = vadd.f32 %v657_v15, %v560_v10  ;;  %v349_v17 = vpop.f32.mrb[3].mxu1  ;;  %v379_v19 = vmax.f32 %v355_v12, 0.0 }
 0x1fc   :  { %v350_v18 = vadd.f32 %v560_v10, %v349_v17  ;;  %v377_v21 = vmax.f32 %v347_v14, 0.0 }
 0x1fd   :  { %v380_v20 = vmax.f32 %v358_v16, 0.0 }
 0x1fe   :  { %v378_v22 = vmax.f32 %v350_v18, 0.0 }
 0x1ff   :  { %v403_v23 = vpack.c.bf16 %v380_v20, %v379_v19 }
 0x200   :  { %v402_v24 = vpack.c.bf16 %v378_v22, %v377_v21  ;;  %v660_v25 = vpop.f32.mrb[4].mxu1 }
 0x201   :  { %v371_v26 = vadd.f32 %v660_v25, %v560_v10  ;;  %v362_v27 = vpop.f32.mrb[5].mxu1 }
 0x202   :  { %v363_v28 = vadd.f32 %v560_v10, %v362_v27  ;;  %v661_v29 = vpop.f32.mrb[6].mxu1  ;;  %678 = vmatprep.mubr.bf16.mxu0 %v402_v24 }
 0x203   :  { %v374_v30 = vadd.f32 %v661_v29, %v560_v10  ;;  %v365_v31 = vpop.f32.mrb[7].mxu1  ;;  %679 = vmatmul.mubr.bf16.vlgmr.msra.gmra.mrb[8].mxu0 %v403_v23  ;;  %v383_v33 = vmax.f32 %v371_v26, 0.0 }
 0x204   :  { %v366_v32 = vadd.f32 %v560_v10, %v365_v31  ;;  %v381_v35 = vmax.f32 %v363_v28, 0.0 }
 0x205   :  { %v384_v34 = vmax.f32 %v374_v30, 0.0 }
 0x206   :  { %v382_v36 = vmax.f32 %v366_v32, 0.0 }
 0x207   :  { %v405_v37 = vpack.c.bf16 %v384_v34, %v383_v33 }
 0x208   :  { %v404_v38 = vpack.c.bf16 %v382_v36, %v381_v35 }
 0x20a   :  { %682 = vmatprep.mubr.bf16.mxu1 %v404_v38 }
 0x20b   :  { %683 = vmatmul.mubr.bf16.vlgmr.msra.gmra.mrb[8].mxu1 %v405_v37 }
 0x2d6   :  { %v680_v40 = vpop.f32.mrb[8].mxu0 }
 0x2d7   :  { %v503_v41 = vadd.f32 %v680_v40, %v569_v39  ;;  %v494_v42 = vpop.f32.mrb[9].mxu0 }
 0x2d8   :  { %v495_v43 = vadd.f32 %v569_v39, %v494_v42  ;;  %v681_v44 = vpop.f32.mrb[10].mxu0 }
 0x2d9   :  { %527 = vst [vmem:[#allocation8 + $0x10] sm:$0xff] %v503_v41  ;;  %v506_v45 = vadd.f32 %v681_v44, %v569_v39  ;;  %v497_v46 = vpop.f32.mrb[11].mxu0 }
 0x2da   :  { %525 = vst [vmem:[#allocation8] sm:$0xff] %v495_v43  ;;  %v498_v47 = vadd.f32 %v569_v39, %v497_v46 }
 0x2db   :  { %528 = vst [vmem:[#allocation8 + $0x18] sm:$0xff] %v506_v45 }
 0x2dc   :  { %526 = vst [vmem:[#allocation8 + $0x8] sm:$0xff] %v498_v47 }
 0x2de   :  { %v684_v48 = vpop.f32.mrb[8].mxu1 }
 0x2df   :  { %v519_v49 = vadd.f32 %v684_v48, %v569_v39  ;;  %v510_v50 = vpop.f32.mrb[9].mxu1 }
 0x2e0   :  { %v511_v51 = vadd.f32 %v569_v39, %v510_v50  ;;  %v685_v52 = vpop.f32.mrb[10].mxu1 }
 0x2e1   :  { %531 = vst [vmem:[#allocation8 + $0x30] sm:$0xff] %v519_v49  ;;  %v522_v53 = vadd.f32 %v685_v52, %v569_v39  ;;  %v513_v54 = vpop.f32.mrb[11].mxu1 }
 0x2e2   :  { %529 = vst [vmem:[#allocation8 + $0x20] sm:$0xff] %v511_v51  ;;  %v514_v55 = vadd.f32 %v569_v39, %v513_v54 }
 0x2e3   :  { %532 = vst [vmem:[#allocation8 + $0x38] sm:$0xff] %v522_v53 }
 0x2e4   :  { %530 = vst [vmem:[#allocation8 + $0x28] sm:$0xff] %v514_v55 }
 0x2e5   :  { %789 = shalt.err (!%p786_p6)
}
 0x2e6   :  { %s790_s15 = scalar_lea.hbm %s962_s7, 1024 }
 0x2e7   :  { %p791_p7 = scmp.ne.s32.totalorder %s962_s7, %s790_s15  ;;  %p794_p8 = scmp.lt.u32.totalorder %s790_s15, %s962_s7 }
 0x2e9   :  { %p796_p9 = pnand %p794_p8, %p791_p7 }
 0x2eb   :  { %799 = shalt.err (!%p796_p9)
}
 0x2ec   :  { %s812_s20 = smov 128   ;;  %s813_s21 = smov 8  }
 0x2ed   :  { %544 = dma.vmem_to_hbm [thread:$0]  %s539_s12, 1024, %s962_s7, [#allocation5], %s812_s20, %s812_s20, %s813_s21  }
 0x2ee   :  { %804 = dma.done.wait [#allocation5], 1024  }
 0x2ef   :  { %805 = vsyncadd [#allocation5], 4294966272 }
 0x2f0   :  { %548 = vsyncpa [#allocation4], 1 }
 0x2f1   :  { %549 = vsyncpa [#allocation7], 1 }
 0x2f2   :  { %550 = vsyncpa [#allocation5], 1 }

</bundles_post_ra>
